<compile_context>
chip_gen: v7x
topology: tpu7x:2x2x1
jax: 0.10.0
libtpu: 0.0.40
codegen_flags: <defaults>
</compile_context>

<pallas_src>
import functools

import numpy as np

import jax
import jax.numpy as jnp
from jax.experimental import pallas as pl
from jax.experimental.pallas import tpu as pltpu


def _l2_min_mode_kernel(loc_ref, tgt_ref, msk_ref, comp_ref, sumd_ref, out_ref,
                        *, n_total, needs_mask):
    """One agent tile: per-agent min-over-modes masked L2 sums -> (num, den)."""
    num_modes, tn, _t2d = loc_ref.shape

    comp = comp_ref[...]                              # [T*2D, T*D]  (loc dtype)
    sumd = sumd_ref[...]                              # [T*D, T]     f32
    tgt = tgt_ref[...].astype(jnp.float32)            # [tn, T*D]
    mskf = msk_ref[...].astype(jnp.float32)           # [tn, T]

    if needs_mask:
        # Only compiled in when the last agent tile is partial (N % tn != 0).
        row = jax.lax.broadcasted_iota(jnp.int32, (tn, 1), 0)
        valid = (pl.program_id(0) * tn + row) < n_total          # [tn, 1]
        mskf = jnp.where(valid, mskf, 0.0)

    best = None
    for mi in range(num_modes):                       # small static unroll over modes
        # De-interleave the (x, y) coordinate lanes out of the (loc, scale)
        # interleaved layout on the MXU; f32 accumulation upcasts bf16 inputs.
        loc_c = jnp.dot(loc_ref[mi], comp,
                        preferred_element_type=jnp.float32)      # [tn, T*D]
        diff = loc_c - tgt
        # Per-timestep sum over D (constant 0/1 matmul on the MXU).
        tsum = jnp.dot(diff * diff, sumd,
                       preferred_element_type=jnp.float32)       # [tn, T]
        l2 = jnp.sqrt(tsum)
        a = jnp.sum(l2 * mskf, axis=1, keepdims=True)            # [tn, 1]
        if needs_mask:
            # select() does not propagate NaN/Inf from garbage sublane rows.
            a = jnp.where(valid, a, 0.0)
        best = a if best is None else jnp.minimum(best, a)

    num = jnp.sum(best)                               # sum_agents min_m sum_t mask*l2
    den = jnp.sum(mskf)                               # sum of reg_mask in this tile

    # Lane-dense partial-output slab: sublane 0 carries num, the rest carry den.
    sub = jax.lax.broadcasted_iota(jnp.int32, out_ref.shape, 1)
    out_ref[...] = jnp.where(sub == 0, num, den)


def _choose_agent_tile(n, per_agent_bytes, budget=20 * 1024 * 1024, cap=2048):
    """Agent (sublane) tile: as large as VMEM allows, but capped near ceil(N/2)
    so the grid has >= 2 blocks and both v7x TensorCores get work."""
    if n <= 8:
        return n
    fit = (budget // max(per_agent_bytes, 1)) // 8 * 8
    fit = max(8, min(cap, fit))
    half = -(-((n + 1) // 2) // 8) * 8          # round_up(ceil(n/2), 8)
    tn = max(8, min(fit, half))
    return min(tn, n)


def l2_loss(data, output, reduction: str = "mean"):
    if reduction != "mean":
        raise ValueError(f"{reduction} is not a valid value for reduction")

    target = data["y"]                          # [N, T, D]
    loc_scale = output["loc"]                   # [M, N, T, 2D]
    reg_mask = output["reg_mask"]               # [N, T] bool

    m, n, t, two_d = loc_scale.shape
    d = two_d // 2

    # Free reshapes (trailing-dim merges, no HBM copy of the big loc tensor).
    loc_flat = loc_scale.reshape(m, n, t * two_d)           # [M, N, T*2D]
    tgt_flat = target.reshape(n, t * d)                      # [N, T*D]
    msk = reg_mask.astype(jnp.int8)                          # [N, T]  (1 B/elt)

    # Tiny constant selection matrices (host-built, passed as resident inputs).
    #   comp[t*2D + k, t*D + k] = 1  for k < D   -> picks the coordinate lanes
    #   sumd[t*D  + k, t]       = 1  for k < D   -> per-timestep sum over D
    comp_np = np.zeros((t * two_d, t * d), np.float32)
    sumd_np = np.zeros((t * d, t), np.float32)
    for ti in range(t):
        for k in range(d):
            comp_np[ti * two_d + k, ti * d + k] = 1.0
            sumd_np[ti * d + k, ti] = 1.0
    comp = jnp.asarray(comp_np, dtype=loc_scale.dtype)       # match MXU lhs dtype
    sumd = jnp.asarray(sumd_np, dtype=jnp.float32)

    # Per-agent VMEM footprint: double-buffered input blocks + f32 temporaries.
    loc_isz = loc_scale.dtype.itemsize
    tgt_isz = target.dtype.itemsize
    per_agent = (2 * (m * t * two_d * loc_isz + t * d * tgt_isz + t)
                 + 4 * (2 * t * two_d + 4 * t * d + 4 * t))
    tn = _choose_agent_tile(n, per_agent)
    grid_n = pl.cdiv(n, tn)
    needs_mask = (n % tn) != 0

    kernel = functools.partial(_l2_min_mode_kernel, n_total=n,
                               needs_mask=needs_mask)

    partials = pl.pallas_call(
        kernel,
        out_shape=jax.ShapeDtypeStruct((grid_n, 8, 128), jnp.float32),
        grid=(grid_n,),
        in_specs=[
            pl.BlockSpec((m, tn, t * two_d), lambda i: (0, i, 0)),
            pl.BlockSpec((tn, t * d), lambda i: (i, 0)),
            pl.BlockSpec((tn, t), lambda i: (i, 0)),
            pl.BlockSpec((t * two_d, t * d), lambda i: (0, 0)),   # constant, copied once
            pl.BlockSpec((t * d, t), lambda i: (0, 0)),           # constant, copied once
        ],
        out_specs=pl.BlockSpec((1, 8, 128), lambda i: (i, 0, 0)),
        compiler_params=pltpu.CompilerParams(
            dimension_semantics=("parallel",),
            vmem_limit_bytes=48 * 1024 * 1024,   # stays under v7x's 64 MiB / TC
        ),
    )(loc_flat, tgt_flat, msk, comp, sumd)

    num = jnp.sum(partials[:, 0, 0])
    den = jnp.sum(partials[:, 1, 0])
    # torch returns the python int 0 when reg_mask.sum() == 0; we return 0.0f.
    return jnp.where(den > 0, num / jnp.maximum(den, 1.0), jnp.float32(0.0))


def l2_loss_ref(data, output):
    """Pure-JAX reference mirroring the PyTorch forward for correctness check."""
    target = data["y"].astype(jnp.float32)
    d = output["loc"].shape[-1] // 2
    loc = output["loc"][..., :d].astype(jnp.float32)
    reg_mask = output["reg_mask"]
    l2 = jnp.sqrt(jnp.sum((target[None] - loc) ** 2, axis=-1))   # [M, N, T]
    ade = jnp.where(reg_mask[None], l2, 0.0)
    made_idcs = jnp.argmin(ade.mean(-1), axis=0)                 # [N]
    minl2 = l2[made_idcs, jnp.arange(l2.shape[1])]               # [N, T]
    return jnp.sum(jnp.where(reg_mask, minl2, 0.0)) / jnp.sum(reg_mask)


if __name__ == "__main__":
    # Case 1: small shapes, single agent tile.
    key = jax.random.PRNGKey(0)
    M, N, T, D = 6, 8, 16, 2            # modes, agents, timesteps, coord dim
    k1, k2, k3 = jax.random.split(key, 3)
    y = jax.random.normal(k1, (N, T, D), dtype=jnp.float32)
    loc_scale = jax.random.normal(k2, (M, N, T, 2 * D), dtype=jnp.float32)
    reg_mask = jax.random.bernoulli(k3, 0.7, (N, T))
    data = {"y": y}
    output = {"loc": loc_scale, "reg_mask": reg_mask}

    loss = jax.block_until_ready(l2_loss(data, output))
    ref = l2_loss_ref(data, output)
    assert jnp.allclose(loss, ref, rtol=2e-4, atol=1e-6), (loss, ref)

    # Case 2: N not a multiple of the tile -> 2-block grid + partial-tile mask path.
    M2, N2, T2, D2 = 4, 20, 12, 2
    k4, k5, k6 = jax.random.split(jax.random.PRNGKey(1), 3)
    y2 = jax.random.normal(k4, (N2, T2, D2), dtype=jnp.float32)
    ls2 = jax.random.normal(k5, (M2, N2, T2, 2 * D2), dtype=jnp.float32)
    rm2 = jax.random.bernoulli(k6, 0.6, (N2, T2))
    data2 = {"y": y2}
    out2 = {"loc": ls2, "reg_mask": rm2}

    loss2 = jax.block_until_ready(l2_loss(data2, out2))
    ref2 = l2_loss_ref(data2, out2)
    assert jnp.allclose(loss2, ref2, rtol=2e-4, atol=1e-6), (loss2, ref2)

    print("KERNEL_OK")
</pallas_src>

<mosaic_0001>
module attributes {stable_mosaic.version = 11 : i64} {
  func.func @_l2_min_mode_kernel(%arg0: i32, %arg1: memref<6x8x64xf32, #tpu.memory_space<vmem>>, %arg2: memref<8x32xf32, #tpu.memory_space<vmem>>, %arg3: memref<8x16xi8, #tpu.memory_space<vmem>>, %arg4: memref<64x32xf32, #tpu.memory_space<vmem>>, %arg5: memref<32x16xf32, #tpu.memory_space<vmem>>, %arg6: memref<1x8x128xf32, #tpu.memory_space<vmem>>) attributes {dimension_semantics = [#tpu.dimension_semantics<parallel>], iteration_bounds = array<i64: 1>, scalar_prefetch = 0 : i64, scratch_operands = 0 : i64, tpu.core_type = #tpu.core_type<tc>, window_params = [{transform_indices = @transform_0, window_bounds = array<i64: 6, 8, 64>}, {transform_indices = @transform_1, window_bounds = array<i64: 8, 32>}, {transform_indices = @transform_2, window_bounds = array<i64: 8, 16>}, {pipeline_mode = #tpu.pipeline_mode<synchronous>, transform_indices = @transform_3, window_bounds = array<i64: 64, 32>}, {pipeline_mode = #tpu.pipeline_mode<synchronous>, transform_indices = @transform_4, window_bounds = array<i64: 32, 16>}, {transform_indices = @transform_5, window_bounds = array<i64: 1, 8, 128>}]} {
    %c0 = arith.constant 0 : index
    %c0_0 = arith.constant 0 : index
    %0 = vector.load %arg4[%c0, %c0_0] : memref<64x32xf32, #tpu.memory_space<vmem>>, vector<64x32xf32>
    %c0_1 = arith.constant 0 : index
    %c0_2 = arith.constant 0 : index
    %1 = vector.load %arg5[%c0_1, %c0_2] : memref<32x16xf32, #tpu.memory_space<vmem>>, vector<32x16xf32>
    %c0_3 = arith.constant 0 : index
    %c0_4 = arith.constant 0 : index
    %2 = vector.load %arg2[%c0_3, %c0_4] : memref<8x32xf32, #tpu.memory_space<vmem>>, vector<8x32xf32>
    %c0_5 = arith.constant 0 : index
    %c0_6 = arith.constant 0 : index
    %3 = vector.load %arg3[%c0_5, %c0_6] : memref<8x16xi8, #tpu.memory_space<vmem>>, vector<8x16xi8>
    %4 = arith.sitofp %3 : vector<8x16xi8> to vector<8x16xf32>
    %c0_7 = arith.constant 0 : index
    %c0_8 = arith.constant 0 : index
    %c0_9 = arith.constant 0 : index
    %5 = vector.load %arg1[%c0_7, %c0_8, %c0_9] : memref<6x8x64xf32, #tpu.memory_space<vmem>>, vector<1x8x64xf32>
    %6 = vector.shape_cast %5 : vector<1x8x64xf32> to vector<8x64xf32>
    %cst = arith.constant dense<0.000000e+00> : vector<8x32xf32>
    %7 = tpu.matmul %6, %0, %cst {dimension_numbers = #tpu.dot_dimension_numbers<[1], [0], [0], [1], [0, 0, 1, 1], [], []>} : vector<8x64xf32>, vector<64x32xf32>, vector<8x32xf32> -> vector<8x32xf32>
    %8 = arith.subf %7, %2 : vector<8x32xf32>
    %9 = arith.mulf %8, %8 : vector<8x32xf32>
    %cst_10 = arith.constant dense<0.000000e+00> : vector<8x16xf32>
    %10 = tpu.matmul %9, %1, %cst_10 {dimension_numbers = #tpu.dot_dimension_numbers<[1], [0], [0], [1], [0, 0, 1, 1], [], []>} : vector<8x32xf32>, vector<32x16xf32>, vector<8x16xf32> -> vector<8x16xf32>
    %11 = math.sqrt %10 : vector<8x16xf32>
    %12 = arith.mulf %11, %4 : vector<8x16xf32>
    %cst_11 = arith.constant dense<0.000000e+00> : vector<8xf32>
    %13 = vector.multi_reduction <add>, %12, %cst_11 [1] : vector<8x16xf32> to vector<8xf32>
    %14 = vector.shape_cast %13 : vector<8xf32> to vector<8x1xf32>
    %c1 = arith.constant 1 : index
    %c0_12 = arith.constant 0 : index
    %c0_13 = arith.constant 0 : index
    %15 = vector.load %arg1[%c1, %c0_12, %c0_13] : memref<6x8x64xf32, #tpu.memory_space<vmem>>, vector<1x8x64xf32>
    %16 = vector.shape_cast %15 : vector<1x8x64xf32> to vector<8x64xf32>
    %cst_14 = arith.constant dense<0.000000e+00> : vector<8x32xf32>
    %17 = tpu.matmul %16, %0, %cst_14 {dimension_numbers = #tpu.dot_dimension_numbers<[1], [0], [0], [1], [0, 0, 1, 1], [], []>} : vector<8x64xf32>, vector<64x32xf32>, vector<8x32xf32> -> vector<8x32xf32>
    %18 = arith.subf %17, %2 : vector<8x32xf32>
    %19 = arith.mulf %18, %18 : vector<8x32xf32>
    %cst_15 = arith.constant dense<0.000000e+00> : vector<8x16xf32>
    %20 = tpu.matmul %19, %1, %cst_15 {dimension_numbers = #tpu.dot_dimension_numbers<[1], [0], [0], [1], [0, 0, 1, 1], [], []>} : vector<8x32xf32>, vector<32x16xf32>, vector<8x16xf32> -> vector<8x16xf32>
    %21 = math.sqrt %20 : vector<8x16xf32>
    %22 = arith.mulf %21, %4 : vector<8x16xf32>
    %cst_16 = arith.constant dense<0.000000e+00> : vector<8xf32>
    %23 = vector.multi_reduction <add>, %22, %cst_16 [1] : vector<8x16xf32> to vector<8xf32>
    %24 = vector.shape_cast %23 : vector<8xf32> to vector<8x1xf32>
    %25 = arith.minimumf %14, %24 : vector<8x1xf32>
    %c2 = arith.constant 2 : index
    %c0_17 = arith.constant 0 : index
    %c0_18 = arith.constant 0 : index
    %26 = vector.load %arg1[%c2, %c0_17, %c0_18] : memref<6x8x64xf32, #tpu.memory_space<vmem>>, vector<1x8x64xf32>
    %27 = vector.shape_cast %26 : vector<1x8x64xf32> to vector<8x64xf32>
    %cst_19 = arith.constant dense<0.000000e+00> : vector<8x32xf32>
    %28 = tpu.matmul %27, %0, %cst_19 {dimension_numbers = #tpu.dot_dimension_numbers<[1], [0], [0], [1], [0, 0, 1, 1], [], []>} : vector<8x64xf32>, vector<64x32xf32>, vector<8x32xf32> -> vector<8x32xf32>
    %29 = arith.subf %28, %2 : vector<8x32xf32>
    %30 = arith.mulf %29, %29 : vector<8x32xf32>
    %cst_20 = arith.constant dense<0.000000e+00> : vector<8x16xf32>
    %31 = tpu.matmul %30, %1, %cst_20 {dimension_numbers = #tpu.dot_dimension_numbers<[1], [0], [0], [1], [0, 0, 1, 1], [], []>} : vector<8x32xf32>, vector<32x16xf32>, vector<8x16xf32> -> vector<8x16xf32>
    %32 = math.sqrt %31 : vector<8x16xf32>
    %33 = arith.mulf %32, %4 : vector<8x16xf32>
    %cst_21 = arith.constant dense<0.000000e+00> : vector<8xf32>
    %34 = vector.multi_reduction <add>, %33, %cst_21 [1] : vector<8x16xf32> to vector<8xf32>
    %35 = vector.shape_cast %34 : vector<8xf32> to vector<8x1xf32>
    %36 = arith.minimumf %25, %35 : vector<8x1xf32>
    %c3 = arith.constant 3 : index
    %c0_22 = arith.constant 0 : index
    %c0_23 = arith.constant 0 : index
    %37 = vector.load %arg1[%c3, %c0_22, %c0_23] : memref<6x8x64xf32, #tpu.memory_space<vmem>>, vector<1x8x64xf32>
    %38 = vector.shape_cast %37 : vector<1x8x64xf32> to vector<8x64xf32>
    %cst_24 = arith.constant dense<0.000000e+00> : vector<8x32xf32>
    %39 = tpu.matmul %38, %0, %cst_24 {dimension_numbers = #tpu.dot_dimension_numbers<[1], [0], [0], [1], [0, 0, 1, 1], [], []>} : vector<8x64xf32>, vector<64x32xf32>, vector<8x32xf32> -> vector<8x32xf32>
    %40 = arith.subf %39, %2 : vector<8x32xf32>
    %41 = arith.mulf %40, %40 : vector<8x32xf32>
    %cst_25 = arith.constant dense<0.000000e+00> : vector<8x16xf32>
    %42 = tpu.matmul %41, %1, %cst_25 {dimension_numbers = #tpu.dot_dimension_numbers<[1], [0], [0], [1], [0, 0, 1, 1], [], []>} : vector<8x32xf32>, vector<32x16xf32>, vector<8x16xf32> -> vector<8x16xf32>
    %43 = math.sqrt %42 : vector<8x16xf32>
    %44 = arith.mulf %43, %4 : vector<8x16xf32>
    %cst_26 = arith.constant dense<0.000000e+00> : vector<8xf32>
    %45 = vector.multi_reduction <add>, %44, %cst_26 [1] : vector<8x16xf32> to vector<8xf32>
    %46 = vector.shape_cast %45 : vector<8xf32> to vector<8x1xf32>
    %47 = arith.minimumf %36, %46 : vector<8x1xf32>
    %c4 = arith.constant 4 : index
    %c0_27 = arith.constant 0 : index
    %c0_28 = arith.constant 0 : index
    %48 = vector.load %arg1[%c4, %c0_27, %c0_28] : memref<6x8x64xf32, #tpu.memory_space<vmem>>, vector<1x8x64xf32>
    %49 = vector.shape_cast %48 : vector<1x8x64xf32> to vector<8x64xf32>
    %cst_29 = arith.constant dense<0.000000e+00> : vector<8x32xf32>
    %50 = tpu.matmul %49, %0, %cst_29 {dimension_numbers = #tpu.dot_dimension_numbers<[1], [0], [0], [1], [0, 0, 1, 1], [], []>} : vector<8x64xf32>, vector<64x32xf32>, vector<8x32xf32> -> vector<8x32xf32>
    %51 = arith.subf %50, %2 : vector<8x32xf32>
    %52 = arith.mulf %51, %51 : vector<8x32xf32>
    %cst_30 = arith.constant dense<0.000000e+00> : vector<8x16xf32>
    %53 = tpu.matmul %52, %1, %cst_30 {dimension_numbers = #tpu.dot_dimension_numbers<[1], [0], [0], [1], [0, 0, 1, 1], [], []>} : vector<8x32xf32>, vector<32x16xf32>, vector<8x16xf32> -> vector<8x16xf32>
    %54 = math.sqrt %53 : vector<8x16xf32>
    %55 = arith.mulf %54, %4 : vector<8x16xf32>
    %cst_31 = arith.constant dense<0.000000e+00> : vector<8xf32>
    %56 = vector.multi_reduction <add>, %55, %cst_31 [1] : vector<8x16xf32> to vector<8xf32>
    %57 = vector.shape_cast %56 : vector<8xf32> to vector<8x1xf32>
    %58 = arith.minimumf %47, %57 : vector<8x1xf32>
    %c5 = arith.constant 5 : index
    %c0_32 = arith.constant 0 : index
    %c0_33 = arith.constant 0 : index
    %59 = vector.load %arg1[%c5, %c0_32, %c0_33] : memref<6x8x64xf32, #tpu.memory_space<vmem>>, vector<1x8x64xf32>
    %60 = vector.shape_cast %59 : vector<1x8x64xf32> to vector<8x64xf32>
    %cst_34 = arith.constant dense<0.000000e+00> : vector<8x32xf32>
    %61 = tpu.matmul %60, %0, %cst_34 {dimension_numbers = #tpu.dot_dimension_numbers<[1], [0], [0], [1], [0, 0, 1, 1], [], []>} : vector<8x64xf32>, vector<64x32xf32>, vector<8x32xf32> -> vector<8x32xf32>
    %62 = arith.subf %61, %2 : vector<8x32xf32>
    %63 = arith.mulf %62, %62 : vector<8x32xf32>
    %cst_35 = arith.constant dense<0.000000e+00> : vector<8x16xf32>
    %64 = tpu.matmul %63, %1, %cst_35 {dimension_numbers = #tpu.dot_dimension_numbers<[1], [0], [0], [1], [0, 0, 1, 1], [], []>} : vector<8x32xf32>, vector<32x16xf32>, vector<8x16xf32> -> vector<8x16xf32>
    %65 = math.sqrt %64 : vector<8x16xf32>
    %66 = arith.mulf %65, %4 : vector<8x16xf32>
    %cst_36 = arith.constant dense<0.000000e+00> : vector<8xf32>
    %67 = vector.multi_reduction <add>, %66, %cst_36 [1] : vector<8x16xf32> to vector<8xf32>
    %68 = vector.shape_cast %67 : vector<8xf32> to vector<8x1xf32>
    %69 = arith.minimumf %58, %68 : vector<8x1xf32>
    %70 = vector.shape_cast %69 : vector<8x1xf32> to vector<1x8x1xf32>
    %cst_37 = arith.constant dense<0.000000e+00> : vector<1xf32>
    %71 = vector.multi_reduction <add>, %70, %cst_37 [1, 2] : vector<1x8x1xf32> to vector<1xf32>
    %72 = vector.shape_cast %71 : vector<1xf32> to vector<1x1x1xf32>
    %73 = vector.extract %72[0, 0, 0] : f32 from vector<1x1x1xf32>
    %74 = vector.shape_cast %4 : vector<8x16xf32> to vector<1x8x16xf32>
    %cst_38 = arith.constant dense<0.000000e+00> : vector<1xf32>
    %75 = vector.multi_reduction <add>, %74, %cst_38 [1, 2] : vector<1x8x16xf32> to vector<1xf32>
    %76 = vector.shape_cast %75 : vector<1xf32> to vector<1x1x1xf32>
    %77 = vector.extract %76[0, 0, 0] : f32 from vector<1x1x1xf32>
    %78 = tpu.iota {dimensions = array<i32: 1>} : vector<1x8x128xi32>
    %c0_i32 = arith.constant 0 : i32
    %79 = vector.broadcast %c0_i32 : i32 to vector<1x8x128xi32>
    %80 = arith.cmpi eq, %78, %79 : vector<1x8x128xi32>
    %81 = vector.broadcast %73 : f32 to vector<1x8x128xf32>
    %82 = vector.broadcast %77 : f32 to vector<1x8x128xf32>
    %83 = arith.select %80, %81, %82 : vector<1x8x128xi1>, vector<1x8x128xf32>
    %c0_39 = arith.constant 0 : index
    %c0_40 = arith.constant 0 : index
    %c0_41 = arith.constant 0 : index
    %84 = vector.load %arg6[%c0_39, %c0_40, %c0_41] : memref<1x8x128xf32, #tpu.memory_space<vmem>>, vector<1x8x128xf32>
    tpu.vector_store %arg6[%c0_39, %c0_40, %c0_41], %83 {strides = array<i32>} : memref<1x8x128xf32, #tpu.memory_space<vmem>>, vector<1x8x128xf32>,
    return
  }
  func.func @transform_0(%arg0: i32) -> (i32, i32, i32) {
    %c0_i32 = arith.constant 0 : i32
    %c0_i32_0 = arith.constant 0 : i32
    %c0_i32_1 = arith.constant 0 : i32
    return %c0_i32, %arg0, %c0_i32_0 : i32, i32, i32
  }
  func.func @transform_1(%arg0: i32) -> (i32, i32) {
    %c0_i32 = arith.constant 0 : i32
    %c0_i32_0 = arith.constant 0 : i32
    return %arg0, %c0_i32 : i32, i32
  }
  func.func @transform_2(%arg0: i32) -> (i32, i32) {
    %c0_i32 = arith.constant 0 : i32
    %c0_i32_0 = arith.constant 0 : i32
    return %arg0, %c0_i32 : i32, i32
  }
  func.func @transform_3(%arg0: i32) -> (i32, i32) {
    %c0_i32 = arith.constant 0 : i32
    %c0_i32_0 = arith.constant 0 : i32
    %c0_i32_1 = arith.constant 0 : i32
    return %c0_i32, %c0_i32_0 : i32, i32
  }
  func.func @transform_4(%arg0: i32) -> (i32, i32) {
    %c0_i32 = arith.constant 0 : i32
    %c0_i32_0 = arith.constant 0 : i32
    %c0_i32_1 = arith.constant 0 : i32
    return %c0_i32, %c0_i32_0 : i32, i32
  }
  func.func @transform_5(%arg0: i32) -> (i32, i32, i32) {
    %c0_i32 = arith.constant 0 : i32
    %c0_i32_0 = arith.constant 0 : i32
    %c0_i32_1 = arith.constant 0 : i32
    return %arg0, %c0_i32, %c0_i32_0 : i32, i32, i32
  }
}

</mosaic_0001>

<bundles_post_ra>
// kernel: tpu_custom_call.1
= control target key start
LH: loop header
LB: loop body
LE: loop exit
PB: predicated region body
PF: predicated region fallthrough
CT: control target
= control target key end

     0   :  { %v1485_v3 = vmov 0.0|0.0   ;;  %vm1486_vm0 = vmmov 0   ;;  %v1487_v6 = vmov 0.0   ;;  %s1735_s0 = inlined_call_operand.vmem [shape: f32[6,8,64], index: 0, kind: input, shape index: {}]   ;;  %s1736_s1 = inlined_call_operand.vmem [shape: f32[8,32], index: 1, kind: input, shape index: {}]   ;;  %s1737_s2 = inlined_call_operand.vmem [shape: s8[8,16], index: 2, kind: input, shape index: {}]   ;;  %s1738_s3 = inlined_call_operand.vmem [shape: f32[64,32], index: 3, kind: input, shape index: {}]   ;;  %s1739_s4 = inlined_call_operand.vmem [shape: f32[32,16], index: 4, kind: input, shape index: {}]   ;;  %s1740_s5 = inlined_call_operand.hbm [shape: f32[1,8,128], index: 5, kind: output, shape index: {}]  }
   0x1   :  { %v21_v0 = vld [vmem:[%s1738_s3] sm:$0xff]  ;;  %v22_v1 = vld [vmem:[%s1738_s3 + $0x8] sm:$0xff]  ;;  %v23_v2 = vld [vmem:[%s1738_s3 + $0x10] sm:$0xff]  ;;  %1333 = vmatprep.subr.bf16.mxu0 %v1485_v3  ;;  %1169 = vmatprep.mubr.msk.f32.mxu0 %vm1486_vm0, %v1487_v6 }
   0x2   :  { %v1529_v4 = vpack.c.bf16 %v22_v1, %v21_v0  ;;  %v24_v5 = vld [vmem:[%s1738_s3 + $0x18] sm:$0xff]  ;;  %1345 = vmatprep.subr.bf16.mxu1 %v1485_v3  ;;  %1180 = vmatprep.mubr.msk.f32.mxu1 %vm1486_vm0, %v1487_v6  ;;  %v29_v8 = vld [vmem:[%s1739_s4] sm:$0xff]  ;;  %v30_v9 = vld [vmem:[%s1739_s4 + $0x8] sm:$0xff] }
   0x3   :  { %v1540_v7 = vpack.c.bf16 %v24_v5, %v23_v2  ;;  %v25_v10 = vld [vmem:[%s1738_s3 + $0x20] sm:$0xff]  ;;  %v26_v11 = vld [vmem:[%s1738_s3 + $0x28] sm:$0xff]  ;;  %v1555_v12 = vpack.c.bf16 %v30_v9, %v29_v8 }
   0x4   :  { %1335 = vmatpush3.bf16.msra.mxu0 %v1529_v4 }
   0x5   :  { %1336 = vmatprep.subr.bf16.mxu0 %v1485_v3 }
   0x6   :  { %10 = vsyncpa [#allocation3], 0  ;;  %1347 = vmatpush3.bf16.msra.mxu1 %v1555_v12  ;;  %v1559_v13 = vpack.c.bf16 %v26_v11, %v25_v10  ;;  %v27_v14 = vld [vmem:[%s1738_s3 + $0x30] sm:$0xff]  ;;  %v28_v15 = vld [vmem:[%s1738_s3 + $0x38] sm:$0xff]  ;;  %vm38_vm1 = vcmask 523264   ;;  %vm114_vm2 = vcmask 261120  }
   0x7   :  { %1348 = vmatprep.subr.bf16.mxu1 %v1485_v3  ;;  %v1570_v16 = vpack.c.bf16 %v28_v15, %v27_v14  ;;  %v37_v17 = vld [vmem:[%s1735_s0] sm:$0xff]  ;;  %v31_v18 = vld [vmem:[%s1739_s4 + $0x10] sm:$0xff]  ;;  %v32_v19 = vld [vmem:[%s1739_s4 + $0x18] sm:$0xff]  ;;  %vm196_vm5 = vcmask 130048  }
   0x8   :  { %1338 = vmatpush3.bf16.msra.mxu0 %v1540_v7  ;;  %v1589_v20 = vpack.c.bf16 %v32_v19, %v31_v18  ;;  %v1598_v21 = vld [vmem:[%s1736_s1] sm:$0xff]  ;;  %v1054_v26 = vld [vmem:[%s1735_s0 + $0x8] sm:$0xff]  ;;  %v1057_v43 = vld [vmem:[%s1735_s0 + $0x10] sm:$0xff] }
   0x9   :  { %1339 = vmatprep.subr.bf16.mxu0 %v1485_v3  ;;  %v34_v29 = vld [vmem:[%s1737_s2] sm:$0x3]  ;;  %v1060_v57 = vld [vmem:[%s1735_s0 + $0x18] sm:$0xff] }
   0xa   :  { %1350 = vmatpush3.bf16.msra.mxu1 %v1589_v20  ;;  %v35_v30 = vunpack.c.0.s8 %v34_v29  ;;  %v1063_v11 = vld [vmem:[%s1735_s0 + $0x20] sm:$0xff] }
   0xb   :  { %1351 = vmatprep.subr.bf16.mxu1 %v1485_v3 }
   0xc   :  { %1341 = vmatpush3.bf16.msra.mxu0 %v1559_v13  ;;  %v1625_v32 = vcvt.s32.f32 %v35_v30 }
   0xd   :  { %1342 = vmatprep.subr.bf16.mxu0 %v1485_v3 }
  0x10   :  { %1344 = vmatpush3.bf16.msra.mxu0 %v1570_v16 }
  0x11   :  { %1363 = vmatprep.subr.bf16.mxu0 %v1485_v3 }
  0x13   :  { %1170 = vmatmul.mubr.msk.f32.vlgmr.msra.gmra.mrb[0].mxu0 %vm38_vm1, %v37_v17 }
  0x14   :  { %1365 = vmatpush3.bf16.msra.mxu0 %v1555_v12  ;;  %1210 = vmatprep.mubr.msk.f32.mxu0 %vm1486_vm0, %v1487_v6 }
  0x15   :  { %1366 = vmatprep.subr.bf16.mxu0 %v1485_v3 }
  0x18   :  { %1368 = vmatpush3.bf16.msra.mxu0 %v1589_v20 }
  0x19   :  { %1369 = vmatprep.subr.bf16.mxu0 %v1485_v3 }
  0xe6   :  { %v108_v22 = vpop.f32.mrb[0].mxu0 }
  0xe7   :  { %v112_v23 = vsub.f32 %v108_v22, %v1598_v21  ;;  %v1171_v24 = vpop.f32.mrb[1].mxu0 }
  0xe9   :  { %v113_v25 = vmul.f32 %v112_v23, %v112_v23 }
  0xeb   :  { %1181 = vmatmul.mubr.msk.f32.vlgmr.msra.gmra.mrb[0].mxu1 %vm114_vm2, %v113_v25 }
  0xec   :  { %1353 = vmatpush3.bf16.msra.mxu1 %v1529_v4  ;;  %1199 = vmatprep.mubr.msk.f32.mxu1 %vm1486_vm0, %v1487_v6 }
  0xed   :  { %1354 = vmatprep.subr.bf16.mxu1 %v1485_v3 }
  0xf0   :  { %1356 = vmatpush3.bf16.msra.mxu1 %v1540_v7 }
  0xf1   :  { %1357 = vmatprep.subr.bf16.mxu1 %v1485_v3 }
  0xf4   :  { %1359 = vmatpush3.bf16.msra.mxu1 %v1559_v13 }
  0xf5   :  { %1360 = vmatprep.subr.bf16.mxu1 %v1485_v3 }
  0xf8   :  { %1362 = vmatpush3.bf16.msra.mxu1 %v1570_v16 }
  0xf9   :  { %1381 = vmatprep.subr.bf16.mxu1 %v1485_v3 }
  0xfb   :  { %1200 = vmatmul.mubr.msk.f32.vlgmr.msra.gmra.mrb[2].mxu1 %vm38_vm1, %v1054_v26 }
  0xfc   :  { %1383 = vmatpush3.bf16.msra.mxu1 %v1555_v12  ;;  %1240 = vmatprep.mubr.msk.f32.mxu1 %vm1486_vm0, %v1487_v6 }
  0xfd   :  { %1384 = vmatprep.subr.bf16.mxu1 %v1485_v3 }
 0x100   :  { %1386 = vmatpush3.bf16.msra.mxu1 %v1589_v20 }
 0x101   :  { %1387 = vmatprep.subr.bf16.mxu1 %v1485_v3 }
 0x1be   :  { %v184_v27 = vpop.f32.mrb[0].mxu1 }
 0x1bf   :  { %1449 = vrsqrt.f32 %v184_v27  ;;  %v1182_v28 = vpop.f32.mrb[1].mxu1  ;;  %vm190_vm3 = vcmp.eq.f32.partialorder %v184_v27, inf  ;;  %v193_v34 = vand.u32 2147483648, %v184_v27  ;;  %vm192_vm4 = vcmp.eq.f32.partialorder %v184_v27, 0.0 }
 0x1c9   :  { %v1450_v31 = vpop.eup %1449 }
 0x1ca   :  { %v189_v33 = vmul.f32 %v1450_v31, %v184_v27 }
 0x1cc   :  { %v191_v35 = vsel %vm190_vm3, %v184_v27, %v189_v33 }
 0x1cd   :  { %v194_v36 = vsel %vm192_vm4, %v193_v34, %v191_v35 }
 0x1ce   :  { %v271_v37 = vpop.f32.mrb[2].mxu1  ;;  %v195_v38 = vmul.f32 %v194_v36, %v1625_v32 }
 0x1cf   :  { %v275_v39 = vsub.f32 %v271_v37, %v1598_v21  ;;  %v1201_v40 = vpop.f32.mrb[3].mxu1 }
 0x1d0   :  { %v197_v41 = vsel %vm196_vm5, %v195_v38, 0.0 }
 0x1d1   :  { %v276_v42 = vmul.f32 %v275_v39, %v275_v39  ;;  %198 = vadd.xlane.f32.xlu0 %v197_v41 }
 0x1d3   :  { %1211 = vmatmul.mubr.msk.f32.vlgmr.msra.gmra.mrb[2].mxu0 %vm114_vm2, %v276_v42 }
 0x1d4   :  { %1371 = vmatpush3.bf16.msra.mxu0 %v1529_v4  ;;  %1229 = vmatprep.mubr.msk.f32.mxu0 %vm1486_vm0, %v1487_v6 }
 0x1d5   :  { %1372 = vmatprep.subr.bf16.mxu0 %v1485_v3 }
 0x1d8   :  { %1374 = vmatpush3.bf16.msra.mxu0 %v1540_v7 }
 0x1d9   :  { %1375 = vmatprep.subr.bf16.mxu0 %v1485_v3 }
 0x1dc   :  { %1377 = vmatpush3.bf16.msra.mxu0 %v1559_v13 }
 0x1dd   :  { %1378 = vmatprep.subr.bf16.mxu0 %v1485_v3 }
 0x1e0   :  { %1380 = vmatpush3.bf16.msra.mxu0 %v1570_v16 }
 0x1e1   :  { %1399 = vmatprep.subr.bf16.mxu0 %v1485_v3 }
 0x1e3   :  { %1230 = vmatmul.mubr.msk.f32.vlgmr.msra.gmra.mrb[4].mxu0 %vm38_vm1, %v1057_v43 }
 0x1e4   :  { %1401 = vmatpush3.bf16.msra.mxu0 %v1555_v12  ;;  %1270 = vmatprep.mubr.msk.f32.mxu0 %vm1486_vm0, %v1487_v6 }
 0x1e5   :  { %1402 = vmatprep.subr.bf16.mxu0 %v1485_v3 }
 0x1e8   :  { %1404 = vmatpush3.bf16.msra.mxu0 %v1589_v20 }
 0x1e9   :  { %1405 = vmatprep.subr.bf16.mxu0 %v1485_v3 }
 0x2a6   :  { %v346_v44 = vpop.f32.mrb[2].mxu0 }
 0x2a7   :  { %1451 = vrsqrt.f32 %v346_v44  ;;  %v1212_v45 = vpop.f32.mrb[3].mxu0  ;;  %vm352_vm6 = vcmp.eq.f32.partialorder %v346_v44, inf  ;;  %v355_v48 = vand.u32 2147483648, %v346_v44  ;;  %vm354_vm7 = vcmp.eq.f32.partialorder %v346_v44, 0.0 }
 0x2a8   :  { %v1021_v45 = vsel %vm196_vm5, %v1625_v32, 0.0 }
 0x2b1   :  { %v1452_v46 = vpop.eup %1451 }
 0x2b2   :  { %v351_v47 = vmul.f32 %v1452_v46, %v346_v44  ;;  %v199_v46 = vpop.xlane.xlu0 %198 }
 0x2b4   :  { %v353_v49 = vsel %vm352_vm6, %v346_v44, %v351_v47 }
 0x2b5   :  { %v356_v50 = vsel %vm354_vm7, %v355_v48, %v353_v49 }
 0x2b6   :  { %v433_v51 = vpop.f32.mrb[4].mxu0  ;;  %v357_v52 = vmul.f32 %v356_v50, %v1625_v32 }
 0x2b7   :  { %v437_v53 = vsub.f32 %v433_v51, %v1598_v21  ;;  %v1231_v54 = vpop.f32.mrb[5].mxu0 }
 0x2b8   :  { %v358_v55 = vsel %vm196_vm5, %v357_v52, 0.0 }
 0x2b9   :  { %v438_v56 = vmul.f32 %v437_v53, %v437_v53  ;;  %359 = vadd.xlane.f32.xlu0 %v358_v55 }
 0x2bb   :  { %1241 = vmatmul.mubr.msk.f32.vlgmr.msra.gmra.mrb[4].mxu1 %vm114_vm2, %v438_v56 }
 0x2bc   :  { %1389 = vmatpush3.bf16.msra.mxu1 %v1529_v4  ;;  %1259 = vmatprep.mubr.msk.f32.mxu1 %vm1486_vm0, %v1487_v6 }
 0x2bd   :  { %1390 = vmatprep.subr.bf16.mxu1 %v1485_v3 }
 0x2c0   :  { %1392 = vmatpush3.bf16.msra.mxu1 %v1540_v7 }
 0x2c1   :  { %1393 = vmatprep.subr.bf16.mxu1 %v1485_v3 }
 0x2c4   :  { %1395 = vmatpush3.bf16.msra.mxu1 %v1559_v13 }
 0x2c5   :  { %1396 = vmatprep.subr.bf16.mxu1 %v1485_v3 }
 0x2c8   :  { %1398 = vmatpush3.bf16.msra.mxu1 %v1570_v16 }
 0x2c9   :  { %1417 = vmatprep.subr.bf16.mxu1 %v1485_v3 }
 0x2cb   :  { %1260 = vmatmul.mubr.msk.f32.vlgmr.msra.gmra.mrb[6].mxu1 %vm38_vm1, %v1060_v57 }
 0x2cc   :  { %1419 = vmatpush3.bf16.msra.mxu1 %v1555_v12  ;;  %1300 = vmatprep.mubr.msk.f32.mxu1 %vm1486_vm0, %v1487_v6 }
 0x2cd   :  { %1420 = vmatprep.subr.bf16.mxu1 %v1485_v3 }
 0x2d0   :  { %1422 = vmatpush3.bf16.msra.mxu1 %v1589_v20 }
 0x2d1   :  { %1423 = vmatprep.subr.bf16.mxu1 %v1485_v3 }
 0x346   :  { %v360_v47 = vpop.xlane.xlu0 %359 }
 0x347   :  { %v361_v49 = vmin.f32 %v199_v46, %v360_v47 }
 0x38e   :  { %v508_v58 = vpop.f32.mrb[4].mxu1 }
 0x38f   :  { %1453 = vrsqrt.f32 %v508_v58  ;;  %v1242_v59 = vpop.f32.mrb[5].mxu1  ;;  %vm514_vm8 = vcmp.eq.f32.partialorder %v508_v58, inf  ;;  %v517_v62 = vand.u32 2147483648, %v508_v58  ;;  %vm516_vm9 = vcmp.eq.f32.partialorder %v508_v58, 0.0 }
 0x399   :  { %v1454_v60 = vpop.eup %1453 }
 0x39a   :  { %v513_v61 = vmul.f32 %v1454_v60, %v508_v58 }
 0x39c   :  { %v515_v63 = vsel %vm514_vm8, %v508_v58, %v513_v61 }
 0x39d   :  { %v518_v0 = vsel %vm516_vm9, %v517_v62, %v515_v63 }
 0x39e   :  { %v595_v1 = vpop.f32.mrb[6].mxu1  ;;  %v519_v2 = vmul.f32 %v518_v0, %v1625_v32 }
 0x39f   :  { %v599_v5 = vsub.f32 %v595_v1, %v1598_v21  ;;  %v1261_v8 = vpop.f32.mrb[7].mxu1 }
 0x3a0   :  { %v520_v9 = vsel %vm196_vm5, %v519_v2, 0.0 }
 0x3a1   :  { %v600_v10 = vmul.f32 %v599_v5, %v599_v5  ;;  %521 = vadd.xlane.f32.xlu1 %v520_v9 }
 0x3a3   :  { %1271 = vmatmul.mubr.msk.f32.vlgmr.msra.gmra.mrb[6].mxu0 %vm114_vm2, %v600_v10 }
 0x3a4   :  { %1407 = vmatpush3.bf16.msra.mxu0 %v1529_v4  ;;  %1289 = vmatprep.mubr.msk.f32.mxu0 %vm1486_vm0, %v1487_v6 }
 0x3a5   :  { %1408 = vmatprep.subr.bf16.mxu0 %v1485_v3 }
 0x3a8   :  { %1410 = vmatpush3.bf16.msra.mxu0 %v1540_v7 }
 0x3a9   :  { %1411 = vmatprep.subr.bf16.mxu0 %v1485_v3 }
 0x3ac   :  { %1413 = vmatpush3.bf16.msra.mxu0 %v1559_v13 }
 0x3ad   :  { %1414 = vmatprep.subr.bf16.mxu0 %v1485_v3 }
 0x3b0   :  { %1416 = vmatpush3.bf16.msra.mxu0 %v1570_v16 }
 0x3b1   :  { %1435 = vmatprep.subr.bf16.mxu0 %v1485_v3 }
 0x3b3   :  { %1290 = vmatmul.mubr.msk.f32.vlgmr.msra.gmra.mrb[8].mxu0 %vm38_vm1, %v1063_v11  ;;  %v1031_v11 = vlaneseq }
 0x3b4   :  { %1437 = vmatpush3.bf16.msra.mxu0 %v1555_v12  ;;  %1330 = vmatprep.mubr.msk.f32.mxu0 %vm1486_vm0, %v1487_v6 }
 0x3b5   :  { %1438 = vmatprep.subr.bf16.mxu0 %v1485_v3 }
 0x3b8   :  { %1440 = vmatpush3.bf16.msra.mxu0 %v1589_v20  ;;  %v1066_v20 = vld [vmem:[%s1735_s0 + $0x28] sm:$0xff]  ;;  %s1488_s0 = smov [#allocation2]  }
 0x3b9   :  { %s1044_s29 = sshll.u32 %s1488_s0, 4  ;;  %s1045_s29 = int_to_ptr.vmem [resolvable:$true] %s1044_s29 }
 0x3ba   :  { %s1461_s7 = scalar_lea.vmem %s1045_s29, 128  ;;  %p1466_p1 = scmp.lt.s32.totalorder %s1045_s29, %s1045_s29 }
 0x3bb   :  { %p1462_p0 = scmp.ne.s32.totalorder %s1045_s29, %s1461_s7  ;;  %p1467_p2 = scmp.lt.s32.totalorder %s1461_s7, %s1461_s7 }
 0x3bd   :  { %p1468_p3 = por %p1467_p2, %p1466_p1 }
 0x3bf   :  { %p1469_p4 = pnand %p1468_p3, %p1462_p0 }
 0x42e   :  { %v522_v48 = vpop.xlane.xlu1 %521 }
 0x42f   :  { %v523_v51 = vmin.f32 %v361_v49, %v522_v48 }
 0x476   :  { %v670_v14 = vpop.f32.mrb[6].mxu0 }
 0x477   :  { %1455 = vrsqrt.f32 %v670_v14  ;;  %v1272_v15 = vpop.f32.mrb[7].mxu0  ;;  %vm676_vm10 = vcmp.eq.f32.partialorder %v670_v14, inf  ;;  %v679_v19 = vand.u32 2147483648, %v670_v14  ;;  %vm678_vm11 = vcmp.eq.f32.partialorder %v670_v14, 0.0 }
 0x481   :  { %v1456_v17 = vpop.eup %1455 }
 0x482   :  { %v675_v18 = vmul.f32 %v1456_v17, %v670_v14 }
 0x484   :  { %v677_v22 = vsel %vm676_vm10, %v670_v14, %v675_v18  ;;  %v1032_v14 = vshrl.u32 %v1031_v11, 7 }
 0x485   :  { %v680_v23 = vsel %vm678_vm11, %v679_v19, %v677_v22 }
 0x486   :  { %v757_v24 = vpop.f32.mrb[8].mxu0  ;;  %v681_v12 = vmul.f32 %v680_v23, %v1625_v32 }
 0x487   :  { %v761_v25 = vsub.f32 %v757_v24, %v1598_v21  ;;  %v1291_v26 = vpop.f32.mrb[9].mxu0 }
 0x488   :  { %v682_v27 = vsel %vm196_vm5, %v681_v12, 0.0 }
 0x489   :  { %v762_v28 = vmul.f32 %v761_v25, %v761_v25  ;;  %683 = vadd.xlane.f32.xlu1 %v682_v27 }
 0x48b   :  { %1301 = vmatmul.mubr.msk.f32.vlgmr.msra.gmra.mrb[8].mxu1 %vm114_vm2, %v762_v28 }
 0x48c   :  { %1425 = vmatpush3.bf16.msra.mxu1 %v1529_v4  ;;  %1319 = vmatprep.mubr.msk.f32.mxu1 %vm1486_vm0, %v1487_v6  ;;  %vm1010_vm0 = vcmask 7168  }
 0x48d   :  { %1426 = vmatprep.subr.bf16.mxu1 %v1485_v3 }
 0x490   :  { %1428 = vmatpush3.bf16.msra.mxu1 %v1540_v7 }
 0x491   :  { %1429 = vmatprep.subr.bf16.mxu1 %v1485_v3 }
 0x494   :  { %1431 = vmatpush3.bf16.msra.mxu1 %v1559_v13 }
 0x495   :  { %1432 = vmatprep.subr.bf16.mxu1 %v1485_v3 }
 0x498   :  { %1434 = vmatpush3.bf16.msra.mxu1 %v1570_v16 }
 0x49b   :  { %1320 = vmatmul.mubr.msk.f32.vlgmr.msra.gmra.mrb[10].mxu1 %vm38_vm1, %v1066_v20  ;;  %vm1033_vm1 = vcmp.eq.s32.totalorder %v1032_v14, 0 }
 0x516   :  { %v684_v50 = vpop.xlane.xlu1 %683 }
 0x517   :  { %v685_v53 = vmin.f32 %v523_v51, %v684_v50 }
 0x55e   :  { %v832_v4 = vpop.f32.mrb[8].mxu1 }
 0x55f   :  { %1457 = vrsqrt.f32 %v832_v4  ;;  %v1302_v6 = vpop.f32.mrb[9].mxu1  ;;  %vm838_vm12 = vcmp.eq.f32.partialorder %v832_v4, inf  ;;  %v841_v7 = vand.u32 2147483648, %v832_v4  ;;  %vm840_vm13 = vcmp.eq.f32.partialorder %v832_v4, 0.0 }
 0x569   :  { %v1458_v29 = vpop.eup %1457 }
 0x56a   :  { %v837_v30 = vmul.f32 %v1458_v29, %v832_v4 }
 0x56c   :  { %v839_v31 = vsel %vm838_vm12, %v832_v4, %v837_v30 }
 0x56d   :  { %v842_v13 = vsel %vm840_vm13, %v841_v7, %v839_v31 }
 0x56e   :  { %v919_v33 = vpop.f32.mrb[10].mxu1  ;;  %v843_v3 = vmul.f32 %v842_v13, %v1625_v32 }
 0x56f   :  { %v923_v16 = vsub.f32 %v919_v33, %v1598_v21  ;;  %v1321_v34 = vpop.f32.mrb[11].mxu1 }
 0x570   :  { %v844_v35 = vsel %vm196_vm5, %v843_v3, 0.0 }
 0x571   :  { %v924_v36 = vmul.f32 %v923_v16, %v923_v16  ;;  %845 = vadd.xlane.f32.xlu0 %v844_v35 }
 0x573   :  { %1331 = vmatmul.mubr.msk.f32.vlgmr.msra.gmra.mrb[10].mxu0 %vm114_vm2, %v924_v36 }
 0x5fe   :  { %v846_v52 = vpop.xlane.xlu0 %845 }
 0x5ff   :  { %v847_v54 = vmin.f32 %v685_v53, %v846_v52 }
 0x646   :  { %v994_v37 = vpop.f32.mrb[10].mxu0 }
 0x647   :  { %1459 = vrsqrt.f32 %v994_v37  ;;  %v1332_v38 = vpop.f32.mrb[11].mxu0  ;;  %vm1000_vm14 = vcmp.eq.f32.partialorder %v994_v37, inf  ;;  %v1003_v41 = vand.u32 2147483648, %v994_v37  ;;  %vm1002_vm15 = vcmp.eq.f32.partialorder %v994_v37, 0.0 }
 0x651   :  { %v1460_v39 = vpop.eup %1459 }
 0x652   :  { %v999_v40 = vmul.f32 %v1460_v39, %v994_v37 }
 0x654   :  { %v1001_v42 = vsel %vm1000_vm14, %v994_v37, %v999_v40 }
 0x655   :  { %v1004_v43 = vsel %vm1002_vm15, %v1003_v41, %v1001_v42 }
 0x656   :  { %v1005_v44 = vmul.f32 %v1004_v43, %v1625_v32 }
 0x658   :  { %v1006_v21 = vsel %vm196_vm5, %v1005_v44, 0.0 }
 0x659   :  { %1007 = vadd.xlane.f32.xlu1 %v1006_v21 }
 0x65d   :  { %1022 = vadd.xlane.f32.xlu1 %v1021_v45 }
 0x6e6   :  { %v1008_v55 = vpop.xlane.xlu1 %1007 }
 0x6e7   :  { %v1009_v56 = vmin.f32 %v847_v54, %v1008_v55 }
 0x6e9   :  { %v1011_v57 = vsel %vm1010_vm0, %v1009_v56, 0.0 }
 0x6ea   :  { %1012 = vadd.xlane.f32.xlu0 %v1011_v57  ;;  %v1023_v58 = vpop.xlane.xlu1 %1022 }
 0x6eb   :  { %v1024_v59 = vrot.slane %v1023_v58, 4 }
 0x6ed   :  { %v1025_v60 = vadd.f32 %v1024_v59, %v1023_v58 }
 0x6ef   :  { %v1026_v61 = vrot.slane %v1025_v60, 2 }
 0x6f1   :  { %v1027_v0 = vadd.f32 %v1026_v61, %v1025_v60 }
 0x6f3   :  { %v1028_v5 = vrot.slane %v1027_v0, 1 }
 0x6f5   :  { %v1029_v10 = vadd.f32 %v1028_v5, %v1027_v0 }
 0x777   :  { %v1013_v32 = vpop.xlane.xlu0 %1012 }
 0x778   :  { %v1014_v62 = vrot.slane %v1013_v32, 4 }
 0x77a   :  { %v1015_v63 = vadd.f32 %v1014_v62, %v1013_v32 }
 0x77c   :  { %v1016_v1 = vrot.slane %v1015_v63, 2 }
 0x77e   :  { %v1017_v2 = vadd.f32 %v1016_v1, %v1015_v63 }
 0x780   :  { %v1018_v8 = vrot.slane %v1017_v2, 1 }
 0x782   :  { %v1019_v9 = vadd.f32 %v1018_v8, %v1017_v2 }
 0x784   :  { %1441 = vpush %v1019_v9 }
 0x785   :  { %1443 = vpush %v1029_v10 }
 0x7b5   :  { %s1442_s30 = spop %1441 }
 0x7b6   :  { %v1034_v15 = vstv %s1442_s30  ;;  %s1444_s6 = spop %1443 }
 0x7b7   :  { %v1035_v17 = vstv %s1444_s6 }
 0x7b8   :  { %v1036_v18 = vsel %vm1033_vm1, %v1034_v15, %v1035_v17 }
 0x7b9   :  { %1037 = vst [vmem:[#allocation2] sm:$0xff] %v1036_v18 }
 0x7ba   :  { %1472 = shalt.err (!%p1469_p4)
}
 0x7bb   :  { %s1473_s10 = scalar_lea.hbm %s1740_s5, 128 }
 0x7bc   :  { %p1474_p5 = scmp.ne.s32.totalorder %s1740_s5, %s1473_s10  ;;  %p1477_p6 = scmp.lt.u32.totalorder %s1473_s10, %s1740_s5 }
 0x7be   :  { %p1479_p7 = pnand %p1477_p6, %p1474_p5 }
 0x7c0   :  { %1482 = shalt.err (!%p1479_p7)
}
 0x7c1   :  { %1047 = dma.vmem_to_hbm [thread:$0]  %s1045_s29, 128, %s1740_s5, [#allocation3]  }
 0x7c2   :  { %1483 = dma.done.wait [#allocation3], 128  }
 0x7c3   :  { %1484 = vsyncadd [#allocation3], 4294967168 }
 0x7c4   :  { %1051 = vsyncpa [#allocation3], 1 }

</bundles_post_ra>
